<compile_context>
chip_gen: v7x
topology: tpu7x:2x2x1
jax: 0.10.0
libtpu: 0.0.40
codegen_flags: <defaults>
</compile_context>

<pallas_src>
import functools
import math

import jax
import jax.numpy as jnp
import numpy as np
from jax import lax
from jax.experimental import pallas as pl
from jax.experimental.pallas import tpu as pltpu

_VMEM_LIMIT = 32 * 1024 * 1024  # explicit scoped-VMEM budget (safe on v5e/v6e/v7x)


# ---------------------------------------------------------------------------
# Kernel 1: primary 1x1 conv (+ per-tile BN1 statistics)
# ---------------------------------------------------------------------------
def _primary_kernel(x_ref, w_ref, y_ref, stats_ref, *, HW, THW, use_mxu):
    # x_ref: (1, C_in, THW)  w_ref: (C_mid, C_in)
    # y_ref: (1, C_mid, THW) stats_ref: (1, 1, C_mid, 2)  [sum, sum of squares]
    x = x_ref[0].astype(jnp.float32)          # (C_in, THW)   pixels on lanes
    w = w_ref[...].astype(jnp.float32)        # (C_mid, C_in)
    if use_mxu:
        y = jnp.dot(w, x, preferred_element_type=jnp.float32)
    else:
        # tiny channel counts: VPU broadcast-FMA instead of an almost-empty MXU
        y = jnp.zeros((w.shape[0], x.shape[1]), jnp.float32)
        for c in range(x.shape[0]):
            y = y + w[:, c:c + 1] * x[c:c + 1, :]

    # mask the ragged HW tail so BN statistics ignore out-of-bounds lanes
    lane = lax.broadcasted_iota(jnp.int32, (1, THW), 1)
    valid = (pl.program_id(1) * THW + lane) < HW
    ym = jnp.where(valid, y, 0.0)
    s = jnp.sum(ym, axis=1, keepdims=True)          # (C_mid, 1)
    ss = jnp.sum(ym * ym, axis=1, keepdims=True)    # (C_mid, 1)
    stats_ref[...] = jnp.concatenate([s, ss], axis=1).reshape(stats_ref.shape)
    y_ref[0] = y.astype(y_ref.dtype)


# ---------------------------------------------------------------------------
# Kernel 2: BN1-apply + ReLU + depthwise dw_size conv (+ BN2 statistics)
#           depthwise conv done with pltpu.roll along flattened H*W + masks
# ---------------------------------------------------------------------------
def _cheap_kernel(y_ref, bn1_ref, wd_ref, mask_ref, z_ref, stats_ref, *,
                  shifts, ratio, apply_relu):
    # y_ref: (1, C_mid, HW)  bn1_ref: (C_mid, 2)  wd_ref: (C_new, k*k)
    # mask_ref: (k*k, HW)    z_ref: (1, C_new, HW) stats_ref: (1, C_new, 2)
    y = y_ref[0].astype(jnp.float32)                       # (C_mid, HW)
    x1 = y * bn1_ref[:, 0:1] + bn1_ref[:, 1:2]             # folded BN1
    if apply_relu:
        x1 = jnp.maximum(x1, 0.0)
    if ratio > 2:
        # grouped conv: output channel o reads input channel o // (ratio-1)
        x1 = jnp.repeat(x1, ratio - 1, axis=0)

    wd = wd_ref[...].astype(jnp.float32)                   # (C_new, k*k)
    HW = y.shape[-1]
    acc = jnp.zeros((wd.shape[0], HW), jnp.float32)
    for t, d in enumerate(shifts):
        # shifted[p] == x1[p + d]  (cyclic; border wrap removed by mask)
        shifted = x1 if d == 0 else pltpu.roll(x1, (-d) % HW, axis=1)
        acc = acc + shifted * mask_ref[t:t + 1, :] * wd[:, t:t + 1]

    s = jnp.sum(acc, axis=1, keepdims=True)
    ss = jnp.sum(acc * acc, axis=1, keepdims=True)
    stats_ref[...] = jnp.concatenate([s, ss], axis=1)[None]
    z_ref[0] = acc.astype(z_ref.dtype)


# ---------------------------------------------------------------------------
# Kernel 3: BN1/BN2-apply + ReLU + channel concat -> final (N, oup, H*W)
# ---------------------------------------------------------------------------
def _finalize_kernel(y_ref, z_ref, bn1_ref, bn2_ref, o_ref, *, oup, apply_relu):
    y = y_ref[0].astype(jnp.float32)
    z = z_ref[0].astype(jnp.float32)
    x1 = y * bn1_ref[:, 0:1] + bn1_ref[:, 1:2]     # recompute x1 (cheap FMA)
    x2 = z * bn2_ref[:, 0:1] + bn2_ref[:, 1:2]
    if apply_relu:
        x1 = jnp.maximum(x1, 0.0)
        x2 = jnp.maximum(x2, 0.0)
    out = jnp.concatenate([x1, x2], axis=0)        # torch.cat along channels
    o_ref[0] = out[:oup].astype(o_ref.dtype)       # [:, :oup, :, :]


# ---------------------------------------------------------------------------
# Helpers
# ---------------------------------------------------------------------------
def _make_tap_masks(H, W, k):
    """(k*k, H*W) f32 validity masks for zero-padded k x k depthwise taps."""
    p = k // 2
    hh, ww = jnp.meshgrid(jnp.arange(H), jnp.arange(W), indexing="ij")
    hh = hh.reshape(-1)
    ww = ww.reshape(-1)
    masks = []
    for i in range(k):
        for j in range(k):
            dh, dw = i - p, j - p
            masks.append((hh + dh >= 0) & (hh + dh < H)
                         & (ww + dw >= 0) & (ww + dw < W))
    return jnp.stack(masks, axis=0).astype(jnp.float32)


def _fold_bn(stats_sum, M, eps, gamma, beta):
    """stats_sum: (C, 2) [sum, sumsq] -> (C, 2) [scale, shift] f32."""
    mean = stats_sum[:, 0] / M
    var = jnp.maximum(stats_sum[:, 1] / M - mean * mean, 0.0)  # biased (train)
    inv = lax.rsqrt(var + eps)
    if gamma is not None:
        scale = gamma * inv
        shift = beta - mean * scale
    else:
        scale = inv
        shift = -mean * inv
    return jnp.stack([scale, shift], axis=1).astype(jnp.float32)


# ---------------------------------------------------------------------------
# Parameter init (shapes from GhostModule.__init__, deterministic)
# ---------------------------------------------------------------------------
def init_params(key, inp, oup, *, ratio=2, dw_size=3, kernel_size=1, affine=False):
    init_ch = math.ceil(oup / ratio)
    new_ch = init_ch * (ratio - 1)
    k1, k2 = jax.random.split(key)

    def conv_init(k, shape, fan_in):
        bound = 1.0 / math.sqrt(fan_in)
        return jax.random.uniform(k, shape, jnp.float32, -bound, bound)

    params = dict(
        # torch (init_ch, inp, 1, 1) -> (init_ch, inp)
        w_primary=conv_init(k1, (init_ch, inp), inp * kernel_size * kernel_size),
        # torch (new_ch, 1, k, k)
        w_cheap=conv_init(k2, (new_ch, 1, dw_size, dw_size), dw_size * dw_size),
    )
    if affine:
        params.update(g1=jnp.ones((init_ch,), jnp.float32),
                      b1=jnp.zeros((init_ch,), jnp.float32),
                      g2=jnp.ones((new_ch,), jnp.float32),
                      b2=jnp.zeros((new_ch,), jnp.float32))
    # TODO(synk): running_mean/running_var buffer updates of nn.BatchNorm2d are
    # not modeled (they do not affect the training-mode forward output).
    return params


# ---------------------------------------------------------------------------
# GhostModule forward (NCHW in / NCHW out)
# ---------------------------------------------------------------------------
def ghost_module_forward(x_nchw, params, *, oup, ratio=2, dw_size=3,
                         kernel_size=1, stride=1, relu=True, affine=False,
                         eps=1e-5, intermediate_dtype=jnp.float32, tile_hw=2048):
    if kernel_size != 1:
        # TODO(synk): general kernel_size primary conv (spatial kernel) not implemented.
        raise NotImplementedError("only kernel_size=1 primary conv is supported")

    if stride > 1:
        # 1x1 conv with stride s and padding 0 == spatial subsampling first.
        x_nchw = x_nchw[:, :, ::stride, ::stride]

    N, C_in, H, W = x_nchw.shape
    HW = H * W
    M = N * HW
    C_mid = params["w_primary"].shape[0]
    C_new = params["w_cheap"].shape[0]
    k = dw_size

    # lane-dense channel-major layout: (N, C, H*W); no transpose needed.
    x_r = x_nchw.reshape(N, C_in, HW)

    if HW < 128:
        THW = HW
    else:
        THW = max(128, (min(tile_hw, HW) // 128) * 128)
    n_hw = pl.cdiv(HW, THW)

    cp_2d = pltpu.CompilerParams(dimension_semantics=("parallel", "parallel"),
                                 vmem_limit_bytes=_VMEM_LIMIT)
    cp_1d = pltpu.CompilerParams(dimension_semantics=("parallel",),
                                 vmem_limit_bytes=_VMEM_LIMIT)
    use_mxu = C_in >= 32

    # ---- stage 1: primary 1x1 conv + BN1 partial statistics ----------------
    y, stats1 = pl.pallas_call(
        functools.partial(_primary_kernel, HW=HW, THW=THW, use_mxu=use_mxu),
        grid=(N, n_hw),
        in_specs=[pl.BlockSpec((1, C_in, THW), lambda n, t: (n, 0, t)),
                  pl.BlockSpec((C_mid, C_in), lambda n, t: (0, 0))],
        out_specs=[pl.BlockSpec((1, C_mid, THW), lambda n, t: (n, 0, t)),
                   pl.BlockSpec((1, 1, C_mid, 2), lambda n, t: (n, t, 0, 0))],
        out_shape=[jax.ShapeDtypeStruct((N, C_mid, HW), intermediate_dtype),
                   jax.ShapeDtypeStruct((N, n_hw, C_mid, 2), jnp.float32)],
        compiler_params=cp_2d,
    )(x_r, params["w_primary"])

    bn1 = _fold_bn(jnp.sum(stats1, axis=(0, 1)), M, eps,
                   params.get("g1"), params.get("b1"))          # (C_mid, 2)

    # ---- stage 2: BN1+ReLU + depthwise conv + BN2 partial statistics -------
    # TODO(synk): for very large H*W, add H-tiling with a (k-1)-row halo so one
    # image's (C_mid, H*W) block is not required to fit VMEM in a single step.
    p = k // 2
    shifts = tuple((i - p) * W + (j - p) for i in range(k) for j in range(k))
    masks = _make_tap_masks(H, W, k)                            # (k*k, HW)
    wd = params["w_cheap"].reshape(C_new, k * k)

    z, stats2 = pl.pallas_call(
        functools.partial(_cheap_kernel, shifts=shifts, ratio=ratio,
                          apply_relu=relu),
        grid=(N,),
        in_specs=[pl.BlockSpec((1, C_mid, HW), lambda n: (n, 0, 0)),
                  pl.BlockSpec((C_mid, 2), lambda n: (0, 0)),
                  pl.BlockSpec((C_new, k * k), lambda n: (0, 0)),
                  pl.BlockSpec((k * k, HW), lambda n: (0, 0))],
        out_specs=[pl.BlockSpec((1, C_new, HW), lambda n: (n, 0, 0)),
                   pl.BlockSpec((1, C_new, 2), lambda n: (n, 0, 0))],
        out_shape=[jax.ShapeDtypeStruct((N, C_new, HW), intermediate_dtype),
                   jax.ShapeDtypeStruct((N, C_new, 2), jnp.float32)],
        compiler_params=cp_1d,
    )(y, bn1, wd, masks)

    bn2 = _fold_bn(jnp.sum(stats2, axis=0), M, eps,
                   params.get("g2"), params.get("b2"))          # (C_new, 2)

    # ---- stage 3: apply BNs + ReLU, concat channels, write final output ----
    out_r = pl.pallas_call(
        functools.partial(_finalize_kernel, oup=oup, apply_relu=relu),
        grid=(N, n_hw),
        in_specs=[pl.BlockSpec((1, C_mid, THW), lambda n, t: (n, 0, t)),
                  pl.BlockSpec((1, C_new, THW), lambda n, t: (n, 0, t)),
                  pl.BlockSpec((C_mid, 2), lambda n, t: (0, 0)),
                  pl.BlockSpec((C_new, 2), lambda n, t: (0, 0))],
        out_specs=pl.BlockSpec((1, oup, THW), lambda n, t: (n, 0, t)),
        out_shape=jax.ShapeDtypeStruct((N, oup, HW), x_nchw.dtype),
        compiler_params=cp_2d,
    )(y, z, bn1, bn2)

    return out_r.reshape(N, oup, H, W)


# ---------------------------------------------------------------------------
# Pure-JAX reference (no Pallas) for a numerical cross-check
# ---------------------------------------------------------------------------
def reference_forward(x, params, *, oup, ratio=2, dw_size=3, stride=1,
                      relu=True, affine=False, eps=1e-5):
    C_mid = params["w_primary"].shape[0]

    def bn(v, gamma, beta):
        mean = jnp.mean(v, axis=(0, 2, 3), keepdims=True)
        var = jnp.mean((v - mean) ** 2, axis=(0, 2, 3), keepdims=True)
        out = (v - mean) * lax.rsqrt(var + eps)
        if gamma is not None:
            out = out * gamma[None, :, None, None] + beta[None, :, None, None]
        return out

    w1 = params["w_primary"][:, :, None, None]
    y = lax.conv_general_dilated(x, w1, (stride, stride), [(0, 0), (0, 0)],
                                 dimension_numbers=("NCHW", "OIHW", "NCHW"))
    x1 = bn(y, params.get("g1"), params.get("b1"))
    if relu:
        x1 = jnp.maximum(x1, 0.0)

    p = dw_size // 2
    z = lax.conv_general_dilated(x1, params["w_cheap"], (1, 1),
                                 [(p, p), (p, p)],
                                 dimension_numbers=("NCHW", "OIHW", "NCHW"),
                                 feature_group_count=C_mid)
    x2 = bn(z, params.get("g2"), params.get("b2"))
    if relu:
        x2 = jnp.maximum(x2, 0.0)

    return jnp.concatenate([x1, x2], axis=1)[:, :oup]


if __name__ == "__main__":
    key = jax.random.PRNGKey(0)
    kx, kp = jax.random.split(key)

    N, inp, H, W = 2, 4, 16, 16
    oup = 8  # ratio=2 -> init_channels=4, new_channels=4

    x = jax.random.normal(kx, (N, inp, H, W), jnp.float32)
    params = init_params(kp, inp, oup)

    fwd = jax.jit(functools.partial(ghost_module_forward, oup=oup, tile_hw=128))
    out = jax.block_until_ready(fwd(x, params))
    assert out.shape == (N, oup, H, W), out.shape

    ref = jax.block_until_ready(
        reference_forward(x, params, oup=oup, ratio=2, dw_size=3, stride=1,
                          relu=True, affine=False))
    np.testing.assert_allclose(np.asarray(out), np.asarray(ref),
                               atol=1e-3, rtol=1e-3)

    # bf16 intermediates (halves HBM traffic of y/z on v6e/v7x); looser check.
    fwd_bf16 = jax.jit(functools.partial(ghost_module_forward, oup=oup,
                                         tile_hw=128,
                                         intermediate_dtype=jnp.bfloat16))
    out_bf16 = jax.block_until_ready(fwd_bf16(x, params))
    np.testing.assert_allclose(np.asarray(out_bf16), np.asarray(ref),
                               atol=1e-1, rtol=1e-1)

    print("KERNEL_OK")
</pallas_src>

<mosaic_0001>
module attributes {stable_mosaic.version = 11 : i64} {
  func.func @_primary_kernel(%arg0: i32, %arg1: i32, %arg2: memref<1x4x128xf32, #tpu.memory_space<vmem>>, %arg3: memref<4x4xf32, #tpu.memory_space<vmem>>, %arg4: memref<1x4x128xf32, #tpu.memory_space<vmem>>, %arg5: memref<1x1x4x2xf32, #tpu.memory_space<vmem>>) attributes {dimension_semantics = [#tpu.dimension_semantics<parallel>, #tpu.dimension_semantics<parallel>], iteration_bounds = array<i64: 2, 2>, scalar_prefetch = 0 : i64, scratch_operands = 0 : i64, tpu.core_type = #tpu.core_type<tc>, window_params = [{transform_indices = @transform_0, window_bounds = array<i64: 1, 4, 128>}, {pipeline_mode = #tpu.pipeline_mode<synchronous>, transform_indices = @transform_1, window_bounds = array<i64: 4, 4>}, {transform_indices = @transform_2, window_bounds = array<i64: 1, 4, 128>}, {transform_indices = @transform_3, window_bounds = array<i64: 1, 1, 4, 2>}]} {
    %c0 = arith.constant 0 : index
    %c0_0 = arith.constant 0 : index
    %c0_1 = arith.constant 0 : index
    %0 = vector.load %arg2[%c0, %c0_0, %c0_1] : memref<1x4x128xf32, #tpu.memory_space<vmem>>, vector<1x4x128xf32>
    %1 = vector.shape_cast %0 : vector<1x4x128xf32> to vector<4x128xf32>
    %c0_2 = arith.constant 0 : index
    %c0_3 = arith.constant 0 : index
    %2 = vector.load %arg3[%c0_2, %c0_3] : memref<4x4xf32, #tpu.memory_space<vmem>>, vector<4x4xf32>
    %cst = arith.constant 0.000000e+00 : f32
    %3 = vector.broadcast %cst : f32 to vector<4x128xf32>
    %4 = vector.extract_strided_slice %2 {offsets = [0, 0], sizes = [4, 1], strides = [1, 1]} : vector<4x4xf32> to vector<4x1xf32>
    %5 = vector.extract_strided_slice %1 {offsets = [0, 0], sizes = [1, 128], strides = [1, 1]} : vector<4x128xf32> to vector<1x128xf32>
    %6 = vector.broadcast %4 : vector<4x1xf32> to vector<4x128xf32>
    %7 = vector.broadcast %5 : vector<1x128xf32> to vector<4x128xf32>
    %8 = arith.mulf %6, %7 : vector<4x128xf32>
    %9 = arith.addf %3, %8 : vector<4x128xf32>
    %10 = vector.extract_strided_slice %2 {offsets = [0, 1], sizes = [4, 1], strides = [1, 1]} : vector<4x4xf32> to vector<4x1xf32>
    %11 = vector.extract_strided_slice %1 {offsets = [1, 0], sizes = [1, 128], strides = [1, 1]} : vector<4x128xf32> to vector<1x128xf32>
    %12 = vector.broadcast %10 : vector<4x1xf32> to vector<4x128xf32>
    %13 = vector.broadcast %11 : vector<1x128xf32> to vector<4x128xf32>
    %14 = arith.mulf %12, %13 : vector<4x128xf32>
    %15 = arith.addf %9, %14 : vector<4x128xf32>
    %16 = vector.extract_strided_slice %2 {offsets = [0, 2], sizes = [4, 1], strides = [1, 1]} : vector<4x4xf32> to vector<4x1xf32>
    %17 = vector.extract_strided_slice %1 {offsets = [2, 0], sizes = [1, 128], strides = [1, 1]} : vector<4x128xf32> to vector<1x128xf32>
    %18 = vector.broadcast %16 : vector<4x1xf32> to vector<4x128xf32>
    %19 = vector.broadcast %17 : vector<1x128xf32> to vector<4x128xf32>
    %20 = arith.mulf %18, %19 : vector<4x128xf32>
    %21 = arith.addf %15, %20 : vector<4x128xf32>
    %22 = vector.extract_strided_slice %2 {offsets = [0, 3], sizes = [4, 1], strides = [1, 1]} : vector<4x4xf32> to vector<4x1xf32>
    %23 = vector.extract_strided_slice %1 {offsets = [3, 0], sizes = [1, 128], strides = [1, 1]} : vector<4x128xf32> to vector<1x128xf32>
    %24 = vector.broadcast %22 : vector<4x1xf32> to vector<4x128xf32>
    %25 = vector.broadcast %23 : vector<1x128xf32> to vector<4x128xf32>
    %26 = arith.mulf %24, %25 : vector<4x128xf32>
    %27 = arith.addf %21, %26 : vector<4x128xf32>
    %28 = tpu.iota {dimensions = array<i32: 1>} : vector<1x128xi32>
    %c128_i32 = arith.constant 128 : i32
    %29 = arith.muli %arg1, %c128_i32 : i32
    %30 = vector.broadcast %29 : i32 to vector<1x128xi32>
    %31 = arith.addi %30, %28 : vector<1x128xi32>
    %c256_i32 = arith.constant 256 : i32
    %32 = vector.broadcast %c256_i32 : i32 to vector<1x128xi32>
    %33 = arith.cmpi slt, %31, %32 : vector<1x128xi32>
    %cst_4 = arith.constant 0.000000e+00 : f32
    %34 = vector.shape_cast %33 : vector<1x128xi1> to vector<1x128xi1>
    %35 = vector.broadcast %34 : vector<1x128xi1> to vector<4x128xi1>
    %36 = vector.broadcast %cst_4 : f32 to vector<4x128xf32>
    %37 = arith.select %35, %27, %36 : vector<4x128xi1>, vector<4x128xf32>
    %cst_5 = arith.constant dense<0.000000e+00> : vector<4xf32>
    %38 = vector.multi_reduction <add>, %37, %cst_5 [1] : vector<4x128xf32> to vector<4xf32>
    %39 = vector.shape_cast %38 : vector<4xf32> to vector<4x1xf32>
    %40 = arith.mulf %37, %37 : vector<4x128xf32>
    %cst_6 = arith.constant dense<0.000000e+00> : vector<4xf32>
    %41 = vector.multi_reduction <add>, %40, %cst_6 [1] : vector<4x128xf32> to vector<4xf32>
    %42 = vector.shape_cast %41 : vector<4xf32> to vector<4x1xf32>
    %43 = tpu.concatenate %39, %42 in 1 : vector<4x1xf32>, vector<4x1xf32> -> vector<4x2xf32>
    %44 = vector.shape_cast %43 : vector<4x2xf32> to vector<1x1x4x2xf32>
    %c0_7 = arith.constant 0 : index
    %c0_8 = arith.constant 0 : index
    %c0_9 = arith.constant 0 : index
    %c0_10 = arith.constant 0 : index
    %45 = vector.load %arg5[%c0_7, %c0_8, %c0_9, %c0_10] : memref<1x1x4x2xf32, #tpu.memory_space<vmem>>, vector<1x1x4x2xf32>
    tpu.vector_store %arg5[%c0_7, %c0_8, %c0_9, %c0_10], %44 {strides = array<i32>} : memref<1x1x4x2xf32, #tpu.memory_space<vmem>>, vector<1x1x4x2xf32>,
    %c0_11 = arith.constant 0 : index
    %c0_12 = arith.constant 0 : index
    %c0_13 = arith.constant 0 : index
    %46 = vector.load %arg4[%c0_11, %c0_12, %c0_13] : memref<1x4x128xf32, #tpu.memory_space<vmem>>, vector<1x4x128xf32>
    %47 = vector.shape_cast %46 : vector<1x4x128xf32> to vector<4x128xf32>
    %48 = vector.shape_cast %27 : vector<4x128xf32> to vector<1x4x128xf32>
    tpu.vector_store %arg4[%c0_11, %c0_12, %c0_13], %48 {strides = array<i32>} : memref<1x4x128xf32, #tpu.memory_space<vmem>>, vector<1x4x128xf32>,
    return
  }
  func.func @transform_0(%arg0: i32, %arg1: i32) -> (i32, i32, i32) {
    %c0_i32 = arith.constant 0 : i32
    %c0_i32_0 = arith.constant 0 : i32
    return %arg0, %c0_i32, %arg1 : i32, i32, i32
  }
  func.func @transform_1(%arg0: i32, %arg1: i32) -> (i32, i32) {
    %c0_i32 = arith.constant 0 : i32
    %c0_i32_0 = arith.constant 0 : i32
    %c0_i32_1 = arith.constant 0 : i32
    return %c0_i32, %c0_i32_0 : i32, i32
  }
  func.func @transform_2(%arg0: i32, %arg1: i32) -> (i32, i32, i32) {
    %c0_i32 = arith.constant 0 : i32
    %c0_i32_0 = arith.constant 0 : i32
    return %arg0, %c0_i32, %arg1 : i32, i32, i32
  }
  func.func @transform_3(%arg0: i32, %arg1: i32) -> (i32, i32, i32, i32) {
    %c0_i32 = arith.constant 0 : i32
    %c0_i32_0 = arith.constant 0 : i32
    %c0_i32_1 = arith.constant 0 : i32
    return %arg0, %arg1, %c0_i32, %c0_i32_0 : i32, i32, i32, i32
  }
}

module attributes {stable_mosaic.version = 11 : i64} {
  func.func @_finalize_kernel(%arg0: i32, %arg1: i32, %arg2: memref<1x4x128xf32, #tpu.memory_space<vmem>>, %arg3: memref<1x4x128xf32, #tpu.memory_space<vmem>>, %arg4: memref<4x2xf32, #tpu.memory_space<vmem>>, %arg5: memref<4x2xf32, #tpu.memory_space<vmem>>, %arg6: memref<1x8x128xf32, #tpu.memory_space<vmem>>) attributes {dimension_semantics = [#tpu.dimension_semantics<parallel>, #tpu.dimension_semantics<parallel>], iteration_bounds = array<i64: 2, 2>, scalar_prefetch = 0 : i64, scratch_operands = 0 : i64, tpu.core_type = #tpu.core_type<tc>, window_params = [{transform_indices = @transform_0, window_bounds = array<i64: 1, 4, 128>}, {transform_indices = @transform_1, window_bounds = array<i64: 1, 4, 128>}, {pipeline_mode = #tpu.pipeline_mode<synchronous>, transform_indices = @transform_2, window_bounds = array<i64: 4, 2>}, {pipeline_mode = #tpu.pipeline_mode<synchronous>, transform_indices = @transform_3, window_bounds = array<i64: 4, 2>}, {transform_indices = @transform_4, window_bounds = array<i64: 1, 8, 128>}]} {
    %c0 = arith.constant 0 : index
    %c0_0 = arith.constant 0 : index
    %c0_1 = arith.constant 0 : index
    %0 = vector.load %arg2[%c0, %c0_0, %c0_1] : memref<1x4x128xf32, #tpu.memory_space<vmem>>, vector<1x4x128xf32>
    %1 = vector.shape_cast %0 : vector<1x4x128xf32> to vector<4x128xf32>
    %c0_2 = arith.constant 0 : index
    %c0_3 = arith.constant 0 : index
    %c0_4 = arith.constant 0 : index
    %2 = vector.load %arg3[%c0_2, %c0_3, %c0_4] : memref<1x4x128xf32, #tpu.memory_space<vmem>>, vector<1x4x128xf32>
    %3 = vector.shape_cast %2 : vector<1x4x128xf32> to vector<4x128xf32>
    %c0_5 = arith.constant 0 : index
    %c0_6 = arith.constant 0 : index
    %4 = vector.load %arg4[%c0_5, %c0_6] : memref<4x2xf32, #tpu.memory_space<vmem>>, vector<4x1xf32>
    %5 = vector.broadcast %4 : vector<4x1xf32> to vector<4x128xf32>
    %6 = arith.mulf %1, %5 : vector<4x128xf32>
    %c0_7 = arith.constant 0 : index
    %c1 = arith.constant 1 : index
    %7 = vector.load %arg4[%c0_7, %c1] : memref<4x2xf32, #tpu.memory_space<vmem>>, vector<4x1xf32>
    %8 = vector.broadcast %7 : vector<4x1xf32> to vector<4x128xf32>
    %9 = arith.addf %6, %8 : vector<4x128xf32>
    %c0_8 = arith.constant 0 : index
    %c0_9 = arith.constant 0 : index
    %10 = vector.load %arg5[%c0_8, %c0_9] : memref<4x2xf32, #tpu.memory_space<vmem>>, vector<4x1xf32>
    %11 = vector.broadcast %10 : vector<4x1xf32> to vector<4x128xf32>
    %12 = arith.mulf %3, %11 : vector<4x128xf32>
    %c0_10 = arith.constant 0 : index
    %c1_11 = arith.constant 1 : index
    %13 = vector.load %arg5[%c0_10, %c1_11] : memref<4x2xf32, #tpu.memory_space<vmem>>, vector<4x1xf32>
    %14 = vector.broadcast %13 : vector<4x1xf32> to vector<4x128xf32>
    %15 = arith.addf %12, %14 : vector<4x128xf32>
    %cst = arith.constant 0.000000e+00 : f32
    %16 = vector.broadcast %cst : f32 to vector<4x128xf32>
    %17 = arith.maximumf %9, %16 : vector<4x128xf32>
    %cst_12 = arith.constant 0.000000e+00 : f32
    %18 = vector.broadcast %cst_12 : f32 to vector<4x128xf32>
    %19 = arith.maximumf %15, %18 : vector<4x128xf32>
    %20 = tpu.concatenate %17, %19 in 0 : vector<4x128xf32>, vector<4x128xf32> -> vector<8x128xf32>
    %c0_13 = arith.constant 0 : index
    %c0_14 = arith.constant 0 : index
    %c0_15 = arith.constant 0 : index
    %21 = vector.load %arg6[%c0_13, %c0_14, %c0_15] : memref<1x8x128xf32, #tpu.memory_space<vmem>>, vector<1x8x128xf32>
    %22 = vector.shape_cast %21 : vector<1x8x128xf32> to vector<8x128xf32>
    %23 = vector.shape_cast %20 : vector<8x128xf32> to vector<1x8x128xf32>
    tpu.vector_store %arg6[%c0_13, %c0_14, %c0_15], %23 {strides = array<i32>} : memref<1x8x128xf32, #tpu.memory_space<vmem>>, vector<1x8x128xf32>,
    return
  }
  func.func @transform_0(%arg0: i32, %arg1: i32) -> (i32, i32, i32) {
    %c0_i32 = arith.constant 0 : i32
    %c0_i32_0 = arith.constant 0 : i32
    return %arg0, %c0_i32, %arg1 : i32, i32, i32
  }
  func.func @transform_1(%arg0: i32, %arg1: i32) -> (i32, i32, i32) {
    %c0_i32 = arith.constant 0 : i32
    %c0_i32_0 = arith.constant 0 : i32
    return %arg0, %c0_i32, %arg1 : i32, i32, i32
  }
  func.func @transform_2(%arg0: i32, %arg1: i32) -> (i32, i32) {
    %c0_i32 = arith.constant 0 : i32
    %c0_i32_0 = arith.constant 0 : i32
    %c0_i32_1 = arith.constant 0 : i32
    return %c0_i32, %c0_i32_0 : i32, i32
  }
  func.func @transform_3(%arg0: i32, %arg1: i32) -> (i32, i32) {
    %c0_i32 = arith.constant 0 : i32
    %c0_i32_0 = arith.constant 0 : i32
    %c0_i32_1 = arith.constant 0 : i32
    return %c0_i32, %c0_i32_0 : i32, i32
  }
  func.func @transform_4(%arg0: i32, %arg1: i32) -> (i32, i32, i32) {
    %c0_i32 = arith.constant 0 : i32
    %c0_i32_0 = arith.constant 0 : i32
    return %arg0, %c0_i32, %arg1 : i32, i32, i32
  }
}

module attributes {stable_mosaic.version = 11 : i64} {
  func.func @_cheap_kernel(%arg0: i32, %arg1: memref<1x4x256xf32, #tpu.memory_space<vmem>>, %arg2: memref<4x2xf32, #tpu.memory_space<vmem>>, %arg3: memref<4x9xf32, #tpu.memory_space<vmem>>, %arg4: memref<9x256xf32, #tpu.memory_space<vmem>>, %arg5: memref<1x4x256xf32, #tpu.memory_space<vmem>>, %arg6: memref<1x4x2xf32, #tpu.memory_space<vmem>>) attributes {dimension_semantics = [#tpu.dimension_semantics<parallel>], iteration_bounds = array<i64: 2>, scalar_prefetch = 0 : i64, scratch_operands = 0 : i64, tpu.core_type = #tpu.core_type<tc>, window_params = [{transform_indices = @transform_0, window_bounds = array<i64: 1, 4, 256>}, {pipeline_mode = #tpu.pipeline_mode<synchronous>, transform_indices = @transform_1, window_bounds = array<i64: 4, 2>}, {pipeline_mode = #tpu.pipeline_mode<synchronous>, transform_indices = @transform_2, window_bounds = array<i64: 4, 9>}, {pipeline_mode = #tpu.pipeline_mode<synchronous>, transform_indices = @transform_3, window_bounds = array<i64: 9, 256>}, {transform_indices = @transform_4, window_bounds = array<i64: 1, 4, 256>}, {transform_indices = @transform_5, window_bounds = array<i64: 1, 4, 2>}]} {
    %c0 = arith.constant 0 : index
    %c0_0 = arith.constant 0 : index
    %c0_1 = arith.constant 0 : index
    %0 = vector.load %arg1[%c0, %c0_0, %c0_1] : memref<1x4x256xf32, #tpu.memory_space<vmem>>, vector<1x4x256xf32>
    %1 = vector.shape_cast %0 : vector<1x4x256xf32> to vector<4x256xf32>
    %c0_2 = arith.constant 0 : index
    %c0_3 = arith.constant 0 : index
    %2 = vector.load %arg2[%c0_2, %c0_3] : memref<4x2xf32, #tpu.memory_space<vmem>>, vector<4x1xf32>
    %3 = vector.broadcast %2 : vector<4x1xf32> to vector<4x256xf32>
    %4 = arith.mulf %1, %3 : vector<4x256xf32>
    %c0_4 = arith.constant 0 : index
    %c1 = arith.constant 1 : index
    %5 = vector.load %arg2[%c0_4, %c1] : memref<4x2xf32, #tpu.memory_space<vmem>>, vector<4x1xf32>
    %6 = vector.broadcast %5 : vector<4x1xf32> to vector<4x256xf32>
    %7 = arith.addf %4, %6 : vector<4x256xf32>
    %cst = arith.constant 0.000000e+00 : f32
    %8 = vector.broadcast %cst : f32 to vector<4x256xf32>
    %9 = arith.maximumf %7, %8 : vector<4x256xf32>
    %c0_5 = arith.constant 0 : index
    %c0_6 = arith.constant 0 : index
    %10 = vector.load %arg3[%c0_5, %c0_6] : memref<4x9xf32, #tpu.memory_space<vmem>>, vector<4x9xf32>
    %cst_7 = arith.constant 0.000000e+00 : f32
    %11 = vector.broadcast %cst_7 : f32 to vector<4x256xf32>
    %c17_i32 = arith.constant 17 : i32
    %12 = tpu.dynamic_rotate %9 by %c17_i32 dim 1 : vector<4x256xf32>, i32 -> vector<4x256xf32>
    %c0_8 = arith.constant 0 : index
    %c0_9 = arith.constant 0 : index
    %13 = vector.load %arg4[%c0_8, %c0_9] : memref<9x256xf32, #tpu.memory_space<vmem>>, vector<1x256xf32>
    %14 = vector.broadcast %13 : vector<1x256xf32> to vector<4x256xf32>
    %15 = arith.mulf %12, %14 : vector<4x256xf32>
    %16 = vector.extract_strided_slice %10 {offsets = [0, 0], sizes = [4, 1], strides = [1, 1]} : vector<4x9xf32> to vector<4x1xf32>
    %17 = vector.broadcast %16 : vector<4x1xf32> to vector<4x256xf32>
    %18 = arith.mulf %15, %17 : vector<4x256xf32>
    %19 = arith.addf %11, %18 : vector<4x256xf32>
    %c16_i32 = arith.constant 16 : i32
    %20 = tpu.dynamic_rotate %9 by %c16_i32 dim 1 : vector<4x256xf32>, i32 -> vector<4x256xf32>
    %c1_10 = arith.constant 1 : index
    %c0_11 = arith.constant 0 : index
    %21 = vector.load %arg4[%c1_10, %c0_11] : memref<9x256xf32, #tpu.memory_space<vmem>>, vector<1x256xf32>
    %22 = vector.broadcast %21 : vector<1x256xf32> to vector<4x256xf32>
    %23 = arith.mulf %20, %22 : vector<4x256xf32>
    %24 = vector.extract_strided_slice %10 {offsets = [0, 1], sizes = [4, 1], strides = [1, 1]} : vector<4x9xf32> to vector<4x1xf32>
    %25 = vector.broadcast %24 : vector<4x1xf32> to vector<4x256xf32>
    %26 = arith.mulf %23, %25 : vector<4x256xf32>
    %27 = arith.addf %19, %26 : vector<4x256xf32>
    %c15_i32 = arith.constant 15 : i32
    %28 = tpu.dynamic_rotate %9 by %c15_i32 dim 1 : vector<4x256xf32>, i32 -> vector<4x256xf32>
    %c2 = arith.constant 2 : index
    %c0_12 = arith.constant 0 : index
    %29 = vector.load %arg4[%c2, %c0_12] : memref<9x256xf32, #tpu.memory_space<vmem>>, vector<1x256xf32>
    %30 = vector.broadcast %29 : vector<1x256xf32> to vector<4x256xf32>
    %31 = arith.mulf %28, %30 : vector<4x256xf32>
    %32 = vector.extract_strided_slice %10 {offsets = [0, 2], sizes = [4, 1], strides = [1, 1]} : vector<4x9xf32> to vector<4x1xf32>
    %33 = vector.broadcast %32 : vector<4x1xf32> to vector<4x256xf32>
    %34 = arith.mulf %31, %33 : vector<4x256xf32>
    %35 = arith.addf %27, %34 : vector<4x256xf32>
    %c1_i32 = arith.constant 1 : i32
    %36 = tpu.dynamic_rotate %9 by %c1_i32 dim 1 : vector<4x256xf32>, i32 -> vector<4x256xf32>
    %c3 = arith.constant 3 : index
    %c0_13 = arith.constant 0 : index
    %37 = vector.load %arg4[%c3, %c0_13] : memref<9x256xf32, #tpu.memory_space<vmem>>, vector<1x256xf32>
    %38 = vector.broadcast %37 : vector<1x256xf32> to vector<4x256xf32>
    %39 = arith.mulf %36, %38 : vector<4x256xf32>
    %40 = vector.extract_strided_slice %10 {offsets = [0, 3], sizes = [4, 1], strides = [1, 1]} : vector<4x9xf32> to vector<4x1xf32>
    %41 = vector.broadcast %40 : vector<4x1xf32> to vector<4x256xf32>
    %42 = arith.mulf %39, %41 : vector<4x256xf32>
    %43 = arith.addf %35, %42 : vector<4x256xf32>
    %c4 = arith.constant 4 : index
    %c0_14 = arith.constant 0 : index
    %44 = vector.load %arg4[%c4, %c0_14] : memref<9x256xf32, #tpu.memory_space<vmem>>, vector<1x256xf32>
    %45 = vector.broadcast %44 : vector<1x256xf32> to vector<4x256xf32>
    %46 = arith.mulf %9, %45 : vector<4x256xf32>
    %47 = vector.extract_strided_slice %10 {offsets = [0, 4], sizes = [4, 1], strides = [1, 1]} : vector<4x9xf32> to vector<4x1xf32>
    %48 = vector.broadcast %47 : vector<4x1xf32> to vector<4x256xf32>
    %49 = arith.mulf %46, %48 : vector<4x256xf32>
    %50 = arith.addf %43, %49 : vector<4x256xf32>
    %c255_i32 = arith.constant 255 : i32
    %51 = tpu.dynamic_rotate %9 by %c255_i32 dim 1 : vector<4x256xf32>, i32 -> vector<4x256xf32>
    %c5 = arith.constant 5 : index
    %c0_15 = arith.constant 0 : index
    %52 = vector.load %arg4[%c5, %c0_15] : memref<9x256xf32, #tpu.memory_space<vmem>>, vector<1x256xf32>
    %53 = vector.broadcast %52 : vector<1x256xf32> to vector<4x256xf32>
    %54 = arith.mulf %51, %53 : vector<4x256xf32>
    %55 = vector.extract_strided_slice %10 {offsets = [0, 5], sizes = [4, 1], strides = [1, 1]} : vector<4x9xf32> to vector<4x1xf32>
    %56 = vector.broadcast %55 : vector<4x1xf32> to vector<4x256xf32>
    %57 = arith.mulf %54, %56 : vector<4x256xf32>
    %58 = arith.addf %50, %57 : vector<4x256xf32>
    %c241_i32 = arith.constant 241 : i32
    %59 = tpu.dynamic_rotate %9 by %c241_i32 dim 1 : vector<4x256xf32>, i32 -> vector<4x256xf32>
    %c6 = arith.constant 6 : index
    %c0_16 = arith.constant 0 : index
    %60 = vector.load %arg4[%c6, %c0_16] : memref<9x256xf32, #tpu.memory_space<vmem>>, vector<1x256xf32>
    %61 = vector.broadcast %60 : vector<1x256xf32> to vector<4x256xf32>
    %62 = arith.mulf %59, %61 : vector<4x256xf32>
    %63 = vector.extract_strided_slice %10 {offsets = [0, 6], sizes = [4, 1], strides = [1, 1]} : vector<4x9xf32> to vector<4x1xf32>
    %64 = vector.broadcast %63 : vector<4x1xf32> to vector<4x256xf32>
    %65 = arith.mulf %62, %64 : vector<4x256xf32>
    %66 = arith.addf %58, %65 : vector<4x256xf32>
    %c240_i32 = arith.constant 240 : i32
    %67 = tpu.dynamic_rotate %9 by %c240_i32 dim 1 : vector<4x256xf32>, i32 -> vector<4x256xf32>
    %c7 = arith.constant 7 : index
    %c0_17 = arith.constant 0 : index
    %68 = vector.load %arg4[%c7, %c0_17] : memref<9x256xf32, #tpu.memory_space<vmem>>, vector<1x256xf32>
    %69 = vector.broadcast %68 : vector<1x256xf32> to vector<4x256xf32>
    %70 = arith.mulf %67, %69 : vector<4x256xf32>
    %71 = vector.extract_strided_slice %10 {offsets = [0, 7], sizes = [4, 1], strides = [1, 1]} : vector<4x9xf32> to vector<4x1xf32>
    %72 = vector.broadcast %71 : vector<4x1xf32> to vector<4x256xf32>
    %73 = arith.mulf %70, %72 : vector<4x256xf32>
    %74 = arith.addf %66, %73 : vector<4x256xf32>
    %c239_i32 = arith.constant 239 : i32
    %75 = tpu.dynamic_rotate %9 by %c239_i32 dim 1 : vector<4x256xf32>, i32 -> vector<4x256xf32>
    %c8 = arith.constant 8 : index
    %c0_18 = arith.constant 0 : index
    %76 = vector.load %arg4[%c8, %c0_18] : memref<9x256xf32, #tpu.memory_space<vmem>>, vector<1x256xf32>
    %77 = vector.broadcast %76 : vector<1x256xf32> to vector<4x256xf32>
    %78 = arith.mulf %75, %77 : vector<4x256xf32>
    %79 = vector.extract_strided_slice %10 {offsets = [0, 8], sizes = [4, 1], strides = [1, 1]} : vector<4x9xf32> to vector<4x1xf32>
    %80 = vector.broadcast %79 : vector<4x1xf32> to vector<4x256xf32>
    %81 = arith.mulf %78, %80 : vector<4x256xf32>
    %82 = arith.addf %74, %81 : vector<4x256xf32>
    %cst_19 = arith.constant dense<0.000000e+00> : vector<4xf32>
    %83 = vector.multi_reduction <add>, %82, %cst_19 [1] : vector<4x256xf32> to vector<4xf32>
    %84 = vector.shape_cast %83 : vector<4xf32> to vector<4x1xf32>
    %85 = arith.mulf %82, %82 : vector<4x256xf32>
    %cst_20 = arith.constant dense<0.000000e+00> : vector<4xf32>
    %86 = vector.multi_reduction <add>, %85, %cst_20 [1] : vector<4x256xf32> to vector<4xf32>
    %87 = vector.shape_cast %86 : vector<4xf32> to vector<4x1xf32>
    %88 = tpu.concatenate %84, %87 in 1 : vector<4x1xf32>, vector<4x1xf32> -> vector<4x2xf32>
    %89 = vector.shape_cast %88 : vector<4x2xf32> to vector<1x4x2xf32>
    %c0_21 = arith.constant 0 : index
    %c0_22 = arith.constant 0 : index
    %c0_23 = arith.constant 0 : index
    %90 = vector.load %arg6[%c0_21, %c0_22, %c0_23] : memref<1x4x2xf32, #tpu.memory_space<vmem>>, vector<1x4x2xf32>
    tpu.vector_store %arg6[%c0_21, %c0_22, %c0_23], %89 {strides = array<i32>} : memref<1x4x2xf32, #tpu.memory_space<vmem>>, vector<1x4x2xf32>,
    %c0_24 = arith.constant 0 : index
    %c0_25 = arith.constant 0 : index
    %c0_26 = arith.constant 0 : index
    %91 = vector.load %arg5[%c0_24, %c0_25, %c0_26] : memref<1x4x256xf32, #tpu.memory_space<vmem>>, vector<1x4x256xf32>
    %92 = vector.shape_cast %91 : vector<1x4x256xf32> to vector<4x256xf32>
    %93 = vector.shape_cast %82 : vector<4x256xf32> to vector<1x4x256xf32>
    tpu.vector_store %arg5[%c0_24, %c0_25, %c0_26], %93 {strides = array<i32>} : memref<1x4x256xf32, #tpu.memory_space<vmem>>, vector<1x4x256xf32>,
    return
  }
  func.func @transform_0(%arg0: i32) -> (i32, i32, i32) {
    %c0_i32 = arith.constant 0 : i32
    %c0_i32_0 = arith.constant 0 : i32
    %c0_i32_1 = arith.constant 0 : i32
    return %arg0, %c0_i32, %c0_i32_0 : i32, i32, i32
  }
  func.func @transform_1(%arg0: i32) -> (i32, i32) {
    %c0_i32 = arith.constant 0 : i32
    %c0_i32_0 = arith.constant 0 : i32
    %c0_i32_1 = arith.constant 0 : i32
    return %c0_i32, %c0_i32_0 : i32, i32
  }
  func.func @transform_2(%arg0: i32) -> (i32, i32) {
    %c0_i32 = arith.constant 0 : i32
    %c0_i32_0 = arith.constant 0 : i32
    %c0_i32_1 = arith.constant 0 : i32
    return %c0_i32, %c0_i32_0 : i32, i32
  }
  func.func @transform_3(%arg0: i32) -> (i32, i32) {
    %c0_i32 = arith.constant 0 : i32
    %c0_i32_0 = arith.constant 0 : i32
    %c0_i32_1 = arith.constant 0 : i32
    return %c0_i32, %c0_i32_0 : i32, i32
  }
  func.func @transform_4(%arg0: i32) -> (i32, i32, i32) {
    %c0_i32 = arith.constant 0 : i32
    %c0_i32_0 = arith.constant 0 : i32
    %c0_i32_1 = arith.constant 0 : i32
    return %arg0, %c0_i32, %c0_i32_0 : i32, i32, i32
  }
  func.func @transform_5(%arg0: i32) -> (i32, i32, i32) {
    %c0_i32 = arith.constant 0 : i32
    %c0_i32_0 = arith.constant 0 : i32
    %c0_i32_1 = arith.constant 0 : i32
    return %arg0, %c0_i32, %c0_i32_0 : i32, i32, i32
  }
}

</mosaic_0001>

<bundles_post_ra>
// kernel: ghost_module_forward.3
= control target key start
LH: loop header
LB: loop body
LE: loop exit
PB: predicated region body
PF: predicated region fallthrough
CT: control target
= control target key end

     0   :  { %s548_s12 = smov 0   ;;  %s550_s13 = smov 0   ;;  %s619_s0 = inlined_call_operand.vmem [shape: f32[2,4,256], index: 0, kind: input, shape index: {}]   ;;  %s620_s1 = inlined_call_operand.vmem [shape: f32[4,4], index: 1, kind: input, shape index: {}]   ;;  %s621_s2 = inlined_call_operand.vmem [shape: f32[2,4,256], index: 2, kind: output, shape index: {0}]   ;;  %s622_s3 = inlined_call_operand.vmem [shape: f32[2,2,4,2], index: 3, kind: output, shape index: {1}]  }
   0x1   :  { %s552_s14 = smov 0   ;;  %s554_s15 = smov 0  }
   0x2   :  { %s556_s16 = smov 0  }
   0x3 LB: > { %s23_s17 = sadd.s32 1, %s514_s14  ;;  %s26_s18 = sadd.s32 1, %s518_s15  ;;  %s522_s16 = sphi %s556_s16, %s14_s16   ;;  %s518_s15 = sphi %s554_s15, %s626_s15   ;;  %s514_s14 = sphi %s552_s14, %s625_s14   ;;  %s510_s13 = sphi %s550_s13, %s624_s13   ;;  %s506_s12 = sphi %s548_s12, %s623_s12  }
   0x4   : > { %p24_p0 = scmp.ge.s32.totalorder %s23_s17, 2  ;;  %p425_p1 = scmp.ge.s32.totalorder %s522_s16, 1 }
   0x5   : > { %p161_p2 = scmp.lt.s32.totalorder %s522_s16, 5 }
   0x6   : > { %s628_s17 = smov (%p24_p0, %s23_s17), 0  ;;  %s630_s18 = smov (!%p24_p0, %s26_s18), %s518_s15 }
   0x7   : > { %p162_p3 = pnand %p425_p1, %p161_p2  ;;  %p28_p4 = scmp.ge.s32.totalorder %s630_s18, 2 }
   0x8   : > { %v224_v0 = vld [vmem:[%s620_s1] sm:$0xf] (!%p162_p3)  ;;  %v524_v1 = vmov (!%p162_p3), 0   ;;  %v525_v2 = vmov (!%p162_p3), 2   ;;  %v526_v3 = vmov (!%p162_p3), 1   ;;  %v527_v4 = vmov (!%p162_p3), 3  }
   0x9   : > { %s632_s18 = smov (%p28_p4, %s630_s18), 0  ;;  %165 = sbr.rel (%p162_p3) target bundleno = 300 (0x12c), region = 28 }
   0xa   : > { %479 = vset.pattern.permute.xlu0 (!%p162_p3), %v524_v1  ;;  %481 = vset.pattern.permute.xlu1 (!%p162_p3), %v525_v2  ;;  %p199_p5 = scmp.lt.s32.totalorder (!%p162_p3), %s510_s13, 1  ;;  %p201_p6 = scmp.lt.s32.totalorder (!%p162_p3), %s506_s12, 1  ;;  %v230_v5 = vlaneseq (!%p162_p3)  ;;  %vm275_vm1 = vcmask (!%p162_p3), 1043456   ;;  %vm283_vm2 = vcmask (!%p162_p3), 7168   ;;  %vm285_vm3 = vcmask (!%p162_p3), 11264  }
   0xb   : > { %227 = vperm.xlu0 (!%p162_p3), %479, %v224_v0   ;;  %247 = vperm.xlu1 (!%p162_p3), %481, %v224_v0   ;;  %s432_s28 = sshll.u32 (!%p162_p3), %s506_s12, 7 }
   0xc   : > { %v231_v6 = vshrl.u32 (!%p162_p3), %v230_v5, 7  ;;  %v267_v16 = vand.u32 (!%p162_p3), 127, %v230_v5  ;;  %v269_v19 = vstv (!%p162_p3), %s432_s28 }
   0xe   : > { %v232_v7 = vsub.s32 (!%p162_p3), 0, %v231_v6  ;;  %v242_v8 = vsub.s32 (!%p162_p3), 1, %v231_v6  ;;  %v252_v11 = vsub.s32 (!%p162_p3), 2, %v231_v6  ;;  %v262_v13 = vsub.s32 (!%p162_p3), 3, %v231_v6 }
   0xf   : > { %480 = vset.pattern.permute.xlu0 (!%p162_p3), %v526_v3  ;;  %482 = vset.pattern.permute.xlu1 (!%p162_p3), %v527_v4  ;;  %v270_v24 = vadd.s32 (!%p162_p3), %v269_v19, %v267_v16 }
  0x10   : > { %237 = vperm.xlu0 %480, %v224_v0   ;;  %257 = vperm.xlu1 %482, %v224_v0   ;;  %s634_s13 = smov (!%p199_p5, %s510_s13), 1 }
  0x11   : > { %s202_s21 = scalar_select %p201_p6, %s506_s12, 1  ;;  %vm271_vm0 = vcmp.lt.s32.totalorder %v270_v24, 256 }
  0x12   : > { %s426_s22 = sshll.u32 %s634_s13, 1 }
  0x13   : > { %s204_s23 = sadd.s32 %s426_s22, %s202_s21 }
  0x14   : > { %483 = vset.pattern.permute.xlu0 %v527_v4  ;;  %s589_s24 = sshll.u32 %s204_s23, 2 }
  0x15   : > { %s206_s27 = scalar_lea.vmem %s619_s0, %s589_s24  ;;  %s214_s4 = scalar_lea.vmem %s621_s2, %s589_s24 }
  0x16   : > { %v223_v9 = vld [vmem:[%s206_s27] sm:$0xf]  ;;  %s222_s7 = scalar_lea.vmem %s622_s3, %s589_s24 }
  0x17   : > { %v233_v14 = vrot.slane %v223_v9, %v232_v7  ;;  %v243_v15 = vrot.slane %v223_v9, %v242_v8  ;;  %v253_v17 = vrot.slane %v223_v9, %v252_v11  ;;  %v263_v18 = vrot.slane %v223_v9, %v262_v13 }
  0x8a   : > { %v228_v10 = vpop.permute.xlu0 %227  ;;  %v248_v12 = vpop.permute.xlu1 %247 }
  0x8b   : > { %v234_v22 = vmul.f32 %v233_v14, %v228_v10  ;;  %v254_v25 = vmul.f32 %v253_v17, %v248_v12 }
  0x8f   : > { %v238_v20 = vpop.permute.xlu0 %237  ;;  %v258_v21 = vpop.permute.xlu1 %257 }
  0x90   : > { %v244_v23 = vmul.f32 %v243_v15, %v238_v20  ;;  %v264_v27 = vmul.f32 %v263_v18, %v258_v21 }
  0x92   : > { %v245_v26 = vadd.f32 %v244_v23, %v234_v22 }
  0x94   : > { %v255_v28 = vadd.f32 %v254_v25, %v245_v26 }
  0x96   : > { %v265_v29 = vadd.f32 %v264_v27, %v255_v28 }
  0x98   : > { %287 = vst [vmem:[%s214_s4] sm:$0xf] %v265_v29  ;;  %v274_v30 = vsel %vm271_vm0, %v265_v29, 0.0 }
  0x99   : > { %v276_v31 = vsel %vm275_vm1, %v274_v30, 0.0  ;;  %v279_v32 = vmul.f32 %v274_v30, %v274_v30 }
  0x9a   : > { %277 = vadd.xlane.f32.xlu1 %v276_v31 }
  0x9b   : > { %v280_v33 = vsel %vm275_vm1, %v279_v32, 0.0 }
  0x9c   : > { %281 = vadd.xlane.f32.xlu0 %v280_v33 }
 0x127   : > { %v278_v34 = vpop.xlane.xlu1 %277 }
 0x129   : > { %v282_v35 = vpop.xlane.xlu0 %281 }
 0x12a   : > { %v284_v36 = vsel %vm283_vm2, %v278_v34, %v282_v35 }
 0x12b   : > { %286 = vst.msk [vmem:[%s222_s7] sm:$0xf] %vm285_vm3, %v284_v36 }
 0x12c PF: > { %s14_s16 = sadd.s32 1, %s522_s16   ;;  %s623_s12 = smov %s514_s14 }
 0x12d   : > { %p11_p7 = scmp.ge.s32.totalorder %s14_s16, 6   ;;  %s624_s13 = smov %s518_s15 }
 0x12e   : > { %s625_s14 = smov %s628_s17  ;;  %s626_s15 = smov %s632_s18 }
 0x12f   :  { %13 = sbr.rel (!%p11_p7) target bundleno = 3 (0x3), region = 70 }

// kernel: ghost_module_forward.5
= control target key start
LH: loop header
LB: loop body
LE: loop exit
PB: predicated region body
PF: predicated region fallthrough
CT: control target
= control target key end

     0   :  { %s523_s15 = smov 0   ;;  %s525_s16 = smov 0   ;;  %s587_s0 = inlined_call_operand.vmem [shape: f32[2,4,256], index: 0, kind: input, shape index: {}]   ;;  %s588_s1 = inlined_call_operand.vmem [shape: f32[2,4,256], index: 1, kind: input, shape index: {}]   ;;  %s589_s2 = inlined_call_operand.vmem [shape: f32[4,2], index: 2, kind: input, shape index: {}]   ;;  %s590_s3 = inlined_call_operand.vmem [shape: f32[4,2], index: 3, kind: input, shape index: {}]   ;;  %s591_s4 = inlined_call_operand.vmem [shape: f32[2,8,256], index: 4, kind: output, shape index: {}]  }
   0x1   :  { %s527_s17 = smov 0   ;;  %s529_s18 = smov 0  }
   0x2   :  { %s531_s19 = smov 0  }
   0x3 LB: > { %s23_s20 = sadd.s32 1, %s486_s17  ;;  %s26_s21 = sadd.s32 1, %s490_s18  ;;  %s494_s19 = sphi %s531_s19, %s14_s19   ;;  %s490_s18 = sphi %s529_s18, %s595_s18   ;;  %s486_s17 = sphi %s527_s17, %s594_s17   ;;  %s482_s16 = sphi %s525_s16, %s593_s16   ;;  %s478_s15 = sphi %s523_s15, %s592_s15  }
   0x4   : > { %p24_p0 = scmp.ge.s32.totalorder %s23_s20, 2  ;;  %p402_p1 = scmp.ge.s32.totalorder %s494_s19, 1 }
   0x5   : > { %p196_p2 = scmp.lt.s32.totalorder %s494_s19, 5 }
   0x6   : > { %s597_s20 = smov (%p24_p0, %s23_s20), 0  ;;  %s599_s21 = smov (!%p24_p0, %s26_s21), %s490_s18 }
   0x7   : > { %p197_p3 = pnand %p402_p1, %p196_p2  ;;  %p28_p4 = scmp.ge.s32.totalorder %s599_s21, 2 }
   0x8   : > { %v274_v0 = vld [vmem:[%s590_s3] sm:$0xf] (!%p197_p3)  ;;  %v496_v1 = vmov (!%p197_p3), 1   ;;  %v497_v2 = vmov (!%p197_p3), 0   ;;  %p236_p5 = scmp.lt.s32.totalorder (!%p197_p3), %s482_s16, 1  ;;  %p238_p6 = scmp.lt.s32.totalorder (!%p197_p3), %s478_s15, 1 }
   0x9   : > { %s601_s21 = smov (%p28_p4, %s599_s21), 0  ;;  %200 = sbr.rel (%p197_p3) target bundleno = 151 (0x97), region = 36 }
   0xa   : > { %454 = vset.pattern.permute.xlu1 (!%p197_p3), %v496_v1  ;;  %453 = vset.pattern.permute.xlu0 (!%p197_p3), %v497_v2  ;;  %v262_v3 = vld [vmem:[%s589_s2] sm:$0xf] (!%p197_p3)  ;;  %vm291_vm0 = vcmask (!%p197_p3), 1043456  }
   0xb   : > { %282 = vperm.xlu1 (!%p197_p3), %454, %v274_v0   ;;  %277 = vperm.xlu0 (!%p197_p3), %453, %v274_v0  }
   0xf   : > { %270 = vperm.xlu1 (!%p197_p3), %454, %v262_v3   ;;  %265 = vperm.xlu0 (!%p197_p3), %453, %v262_v3  }
  0x10   : > { %s603_s16 = smov (!%p236_p5, %s482_s16), 1  ;;  %s605_s15 = smov (!%p238_p6, %s478_s15), 1 }
  0x11   : > { %s403_s26 = sshll.u32 %s603_s16, 1 }
  0x12   : > { %s241_s27 = sadd.s32 %s403_s26, %s605_s15 }
  0x13   : > { %455 = vset.pattern.permute.xlu0 %v496_v1  ;;  %s404_s28 = sshll.u32 %s241_s27, 2  ;;  %s408_s9 = sshll.u32 %s241_s27, 3 }
  0x14   : > { %s251_s5 = scalar_lea.vmem %s588_s1, %s404_s28  ;;  %s243_s8 = scalar_lea.vmem %s587_s0, %s404_s28 }
  0x15   : > { %v261_v4 = vld [vmem:[%s251_s5] sm:$0xf]  ;;  %s259_s12 = scalar_lea.vmem %s591_s4, %s408_s9 }
  0x16   : > { %v260_v8 = vld [vmem:[%s243_s8] sm:$0xf] }
  0x8a   : > { %v283_v5 = vpop.permute.xlu1 %282  ;;  %v278_v6 = vpop.permute.xlu0 %277 }
  0x8b   : > { %v280_v7 = vmul.f32 %v278_v6, %v261_v4 }
  0x8d   : > { %v285_v9 = vadd.f32 %v283_v5, %v280_v7 }
  0x8e   : > { %v266_v10 = vpop.permute.xlu0 %265  ;;  %v271_v13 = vpop.permute.xlu1 %270 }
  0x8f   : > { %v287_v11 = vmax.f32 %v285_v9, 0.0  ;;  %v268_v12 = vmul.f32 %v266_v10, %v260_v8 }
  0x91   : > { %v273_v14 = vadd.f32 %v271_v13, %v268_v12  ;;  %v289_v15 = vrot.slane %v287_v11, 4 }
  0x93   : > { %v286_v16 = vmax.f32 %v273_v14, 0.0 }
  0x95   : > { %v292_v17 = vsel %vm291_vm0, %v286_v16, %v289_v15 }
  0x96   : > { %293 = vst [vmem:[%s259_s12] sm:$0xff] %v292_v17 }
  0x97 PF: > { %s14_s19 = sadd.s32 1, %s494_s19   ;;  %s592_s15 = smov %s486_s17 }
  0x98   : > { %p11_p7 = scmp.ge.s32.totalorder %s14_s19, 6   ;;  %s593_s16 = smov %s490_s18 }
  0x99   : > { %s594_s17 = smov %s597_s20  ;;  %s595_s18 = smov %s601_s21 }
  0x9a   :  { %13 = sbr.rel (!%p11_p7) target bundleno = 3 (0x3), region = 69 }

// kernel: ghost_module_forward.4
= control target key start
LH: loop header
LB: loop body
LE: loop exit
PB: predicated region body
PF: predicated region fallthrough
CT: control target
= control target key end

     0   :  { %s764_s18 = smov 0   ;;  %s905_s0 = inlined_call_operand.vmem [shape: f32[2,4,256], index: 0, kind: input, shape index: {}]   ;;  %s906_s1 = inlined_call_operand.vmem [shape: f32[4,2], index: 1, kind: input, shape index: {}]   ;;  %s907_s2 = inlined_call_operand.vmem [shape: f32[4,9], index: 2, kind: input, shape index: {}]   ;;  %s908_s3 = inlined_call_operand.vmem [shape: f32[9,256], index: 3, kind: input, shape index: {}]   ;;  %s909_s4 = inlined_call_operand.vmem [shape: f32[2,4,256], index: 4, kind: output, shape index: {0}]   ;;  %s910_s5 = inlined_call_operand.vmem [shape: f32[2,4,2], index: 5, kind: output, shape index: {1}]  }
   0x1 LB: > { %s649_s19 = sadd.s32 4294967295, %s714_s18   ;;  %p653_p0 = scmp.ge.s32.totalorder %s714_s18, 1  ;;  %s714_s18 = sphi %s764_s18, %s16_s18  }
   0x2   : > { %p190_p1 = scmp.lt.s32.totalorder %s714_s18, 3 }
   0x4   : > { %p191_p2 = pnand %p653_p0, %p190_p1 }
   0x5   : > { %v237_v0 = vld [vmem:[%s906_s1] sm:$0xf] (!%p191_p2)  ;;  %v716_v1 = vmov (!%p191_p2), 0   ;;  %v717_v3 = vmov (!%p191_p2), 1   ;;  %v718_v4 = vmov (!%p191_p2), 4   ;;  %v719_v5 = vmov (!%p191_p2), 2  }
   0x6   : > { %194 = sbr.rel (%p191_p2) target bundleno = 458 (0x1ca), region = 36  ;;  %697 = vset.pattern.permute.xlu0 (!%p191_p2), %v716_v1  ;;  %v778_v2 = vld [vmem:[%s907_s2] sm:$0xf] (!%p191_p2)  ;;  %699 = vset.pattern.permute.xlu1 (!%p191_p2), %v716_v1  ;;  %v720_v6 = vmov (!%p191_p2), 6   ;;  %v721_v7 = vmov (!%p191_p2), 3   ;;  %v722_v8 = vmov (!%p191_p2), 7   ;;  %v245_v13 = vlaneseq (!%p191_p2) }
   0x7   : > { %240 = vperm.xlu0 (!%p191_p2), %697, %v237_v0   ;;  %293 = vperm.xlu1 (!%p191_p2), %699, %v778_v2   ;;  %v723_v9 = vmov (!%p191_p2), 5   ;;  %v724_v10 = vmov (!%p191_p2), 8   ;;  %p222_p3 = scmp.lt.s32.totalorder (!%p191_p2), %s649_s19, 1  ;;  %v725_v11 = vmov (!%p191_p2), 839922192   ;;  %s726_s30 = smov (!%p191_p2), 16  }
   0x8   : > { %v243_v12 = vunpack.c.l.s4 (!%p191_p2), %v725_v11  ;;  %v246_v15 = vshrl.u32 (!%p191_p2), %v245_v13, 7  ;;  %v662_v20 = vld [vmem:[%s908_s3 + $0x4] ss:$8 sm:$0x3] (!%p191_p2)  ;;  %s727_s6 = smov (!%p191_p2), 17   ;;  %s728_s7 = smov (!%p191_p2), 1  }
   0x9   : > { %s729_s8 = smov (!%p191_p2), 15   ;;  %s730_s9 = smov (!%p191_p2), 113   ;;  %v820_v47 = vand.u32 (!%p191_p2), 127, %v245_v13  ;;  %v663_v48 = vld [vmem:[%s908_s3 + $0x5] ss:$8 sm:$0x3] (!%p191_p2) }
   0xa   : > { %v244_v14 = vunpack.c.0.s8 (!%p191_p2), %v243_v12  ;;  %v795_v17 = vsub.s32 (!%p191_p2), 0, %v246_v15  ;;  %v797_v18 = vsub.s32 (!%p191_p2), 1, %v246_v15  ;;  %s731_s10 = smov (!%p191_p2), 127   ;;  %s732_s11 = smov (!%p191_p2), 111   ;;  %vm541_vm8 = vcmask (!%p191_p2), 1043456  }
   0xb   : > { %698 = vset.pattern.permute.xlu0 (!%p191_p2), %v717_v3  ;;  %700 = vset.pattern.permute.xlu1 (!%p191_p2), %v717_v3  ;;  %s733_s12 = smov (!%p191_p2), 112   ;;  %v277_v49 = vld [vmem:[%s908_s3] ss:$8 sm:$0x3] (!%p191_p2)  ;;  %vm425_vm0 = vcmp.lt.s32.totalorder (!%p191_p2), %v820_v47, 127  ;;  %vm274_vm1 = vcmp.lt.s32.totalorder (!%p191_p2), %v820_v47, 17 }
   0xc   : > { %252 = vperm.xlu0 (!%p191_p2), %698, %v237_v0   ;;  %323 = vperm.xlu1 (!%p191_p2), %700, %v778_v2   ;;  %v247_v16 = vsub.s32 (!%p191_p2), %v244_v14, %v246_v15  ;;  %v396_v23 = vrot.slane (!%p191_p2), %v662_v20, %v795_v17  ;;  %v400_v24 = vrot.slane (!%p191_p2), %v662_v20, %v797_v18  ;;  %v659_v53 = vld [vmem:[%s908_s3 + $0x1] ss:$8 sm:$0x3] (!%p191_p2)  ;;  %vm304_vm2 = vcmp.lt.s32.totalorder (!%p191_p2), %v820_v47, 16 }
   0xd   : > { %s912_s19 = smov (!%p222_p3, %s649_s19), 1  ;;  %v434_v52 = vrot.slane %v663_v48, %v795_v17  ;;  %v438_v54 = vrot.slane %v663_v48, %v797_v18  ;;  %v282_v55 = vrot.slane %v277_v49, %v795_v17  ;;  %v286_v56 = vrot.slane %v277_v49, %v797_v18  ;;  %v661_v13 = vld [vmem:[%s908_s3 + $0x3] ss:$8 sm:$0x3] }
   0xe   : > { %s669_s24 = sshll.u32 %s912_s19, 3  ;;  %v401_v29 = vcombine.low %v396_v23, %v400_v24  ;;  %v313_v59 = vrot.slane %v659_v53, %v795_v17  ;;  %v317_v60 = vrot.slane %v659_v53, %v797_v18  ;;  %vm334_vm3 = vcmp.lt.s32.totalorder %v820_v47, 15 }
   0xf   : > { %s226_s27 = scalar_lea.vmem %s905_s0, %s669_s24  ;;  %vm364_vm4 = vcmp.lt.s32.totalorder %v820_v47, 1  ;;  %v373_v23 = vrot.slane %v661_v13, %v795_v17  ;;  %v377_v24 = vrot.slane %v661_v13, %v797_v18  ;;  %vm455_vm5 = vcmp.lt.s32.totalorder %v820_v47, 113 }
  0x10   : > { %702 = vset.pattern.permute.xlu0 %v718_v4  ;;  %701 = vset.pattern.permute.xlu1 %v719_v5  ;;  %v236_v22 = vld [vmem:[%s226_s27] sm:$0xff]  ;;  %vm485_vm6 = vcmp.lt.s32.totalorder %v820_v47, 112  ;;  %vm515_vm7 = vcmp.lt.s32.totalorder %v820_v47, 111  ;;  %vm554_vm9 = vcmask 7168   ;;  %vm556_vm10 = vcmask 11264  }
  0x11   : > { %405 = vperm.xlu0 %702, %v778_v2   ;;  %353 = vperm.xlu1 %701, %v778_v2   ;;  %v660_v5 = vld [vmem:[%s908_s3 + $0x2] ss:$8 sm:$0x3] }
  0x12   : > { %v343_v11 = vrot.slane %v660_v5, %v795_v17  ;;  %v347_v12 = vrot.slane %v660_v5, %v797_v18 }
  0x15   : > { %705 = vset.pattern.permute.xlu1 %v720_v6  ;;  %703 = vset.pattern.permute.xlu0 %v721_v7 }
  0x16   : > { %474 = vperm.xlu1 %705, %v778_v2   ;;  %383 = vperm.xlu0 %703, %v778_v2  }
  0x1a   : > { %706 = vset.pattern.permute.xlu1 %v722_v8  ;;  %704 = vset.pattern.permute.xlu0 %v723_v9 }
  0x1b   : > { %504 = vperm.xlu1 %706, %v778_v2   ;;  %444 = vperm.xlu0 %704, %v778_v2  }
  0x1f   : > { %707 = vset.pattern.permute.xlu0 %v724_v10 }
  0x86   : > { %v241_v19 = vpop.permute.xlu0 %240  ;;  %v294_v36 = vpop.permute.xlu1 %293 }
  0x87   : > { %v248_v21 = vrot.slane %v241_v19, %v247_v16 }
  0x89   : > { %v250_v26 = vmul.f32 %v248_v21, %v236_v22 }
  0x8b   : > { %v253_v25 = vpop.permute.xlu0 %252  ;;  %v324_v37 = vpop.permute.xlu1 %323 }
  0x8c   : > { %v260_v27 = vrot.slane %v253_v25, %v247_v16 }
  0x8e   : > { %v262_v28 = vadd.f32 %v260_v27, %v250_v26 }
  0x90   : > { %v263_v30 = vmax.f32 %v262_v28, 0.0  ;;  %v406_v31 = vpop.permute.xlu0 %405  ;;  %v354_v38 = vpop.permute.xlu1 %353 }
  0x91   : > { %v413_v32 = vrot.slane %v406_v31, %v247_v16 }
  0x92   : > { %v403_v33 = vmul.f32 %v401_v29, %v263_v30  ;;  %300 = vrot.lane.b32.xlu0 %v263_v30, %s726_s30  ;;  %268 = vrot.lane.b32.xlu1 %v263_v30, %s727_s6  ;;  %v266_v35 = vcombine.high %v263_v30, %v263_v30 }
  0x94   : > { %v809_v34 = vmul.f32 %v413_v32, %v403_v33 }
  0x95   : > { %v812_v39 = vpop.permute.xlu1 %474  ;;  %v814_v40 = vpop.permute.xlu0 %383 }
  0x96   : > { %360 = vrot.lane.b32.xlu0 %v263_v30, %s728_s7  ;;  %330 = vrot.lane.b32.xlu1 %v263_v30, %s729_s8  ;;  %v417_v49 = vcombine.high %v809_v34, %v809_v34 }
  0x9a   : > { %451 = vrot.lane.b32.xlu0 %v263_v30, %s730_s9  ;;  %421 = vrot.lane.b32.xlu1 %v263_v30, %s731_s10  ;;  %v816_v41 = vpop.permute.xlu1 %504  ;;  %v818_v42 = vpop.permute.xlu0 %444 }
  0x9e   : > { %423 = vrot.lane.b32.xlu0 %v266_v35, %s731_s10  ;;  %270 = vrot.lane.b32.xlu1 %v266_v35, %s727_s6  ;;  %s658_s10 = sshll.u32 %s912_s19, 2 }
  0x9f   : > { %s235_s13 = scalar_lea.vmem %s910_s5, %s658_s10 }
  0xa2   : > { %534 = vperm.xlu0 %707, %v778_v2   ;;  %302 = vrot.lane.b32.xlu1 %v266_v35, %s726_s30 }
  0xa6   : > { %511 = vrot.lane.b32.xlu0 %v263_v30, %s732_s11  ;;  %332 = vrot.lane.b32.xlu1 %v266_v35, %s729_s8 }
  0xaa   : > { %362 = vrot.lane.b32.xlu1 %v266_v35, %s728_s7 }
  0xae   : > { %481 = vrot.lane.b32.xlu1 %v263_v30, %s733_s12 }
  0xb2   : > { %453 = vrot.lane.b32.xlu1 %v266_v35, %s730_s9  ;;  %s231_s9 = scalar_lea.vmem %s909_s4, %s669_s24 }
  0xb6   : > { %483 = vrot.lane.b32.xlu1 %v266_v35, %s733_s12 }
  0xba   : > { %513 = vrot.lane.b32.xlu1 %v266_v35, %s732_s11 }
 0x104   : > { %v301_v43 = vpop.permute.xlu0 %300  ;;  %v269_v44 = vpop.permute.xlu1 %268 }
 0x108   : > { %v361_v45 = vpop.permute.xlu0 %360  ;;  %v331_v46 = vpop.permute.xlu1 %330 }
 0x10c   : > { %v828_v50 = vpop.permute.xlu0 %451  ;;  %v422_v51 = vpop.permute.xlu1 %421 }
 0x110   : > { %v424_v57 = vpop.permute.xlu0 %423  ;;  %v271_v58 = vpop.permute.xlu1 %270 }
 0x111   : > { %v426_v61 = vsel %vm425_vm0, %v422_v51, %v424_v57  ;;  %v427_v62 = vsel %vm425_vm0, %v424_v57, %v422_v51  ;;  %v275_v63 = vsel %vm274_vm1, %v269_v44, %v271_v58  ;;  %v276_v0 = vsel %vm274_vm1, %v271_v58, %v269_v44  ;;  %v664_v44 = vld [vmem:[%s908_s3 + $0x6] ss:$8 sm:$0x3] }
 0x112   : > { %v441_v1 = vmul.f32 %v434_v52, %v426_v61  ;;  %v442_v2 = vmul.f32 %v438_v54, %v427_v62  ;;  %v289_v3 = vmul.f32 %v282_v55, %v276_v0  ;;  %v290_v4 = vmul.f32 %v286_v56, %v275_v63  ;;  %v665_v54 = vld [vmem:[%s908_s3 + $0x7] ss:$8 sm:$0x3] }
 0x113   : > { %v464_v52 = vrot.slane %v664_v44, %v795_v17  ;;  %v468_v53 = vrot.slane %v664_v44, %v797_v18  ;;  %v494_v61 = vrot.slane %v665_v54, %v795_v17  ;;  %v498_v62 = vrot.slane %v665_v54, %v797_v18 }
 0x114   : > { %v303_v6 = vpop.permute.xlu1 %302  ;;  %v296_v14 = vmul.f32 %v294_v36, %v289_v3  ;;  %v297_v15 = vmul.f32 %v294_v36, %v290_v4  ;;  %v448_v55 = vmul.f32 %v818_v42, %v442_v2 }
 0x115   : > { %v305_v7 = vsel %vm304_vm2, %v301_v43, %v303_v6  ;;  %v306_v8 = vsel %vm304_vm2, %v303_v6, %v301_v43 }
 0x116   : > { %v320_v9 = vmul.f32 %v313_v59, %v306_v8  ;;  %v321_v10 = vmul.f32 %v317_v60, %v305_v7 }
 0x118   : > { %v326_v16 = vmul.f32 %v324_v37, %v320_v9  ;;  %v327_v19 = vmul.f32 %v324_v37, %v321_v10  ;;  %v333_v20 = vpop.permute.xlu1 %332 }
 0x119   : > { %v335_v21 = vsel %vm334_vm3, %v331_v46, %v333_v20  ;;  %v336_v22 = vsel %vm334_vm3, %v333_v20, %v331_v46 }
 0x11a   : > { %v328_v25 = vadd.f32 %v326_v16, %v296_v14  ;;  %v329_v26 = vadd.f32 %v327_v19, %v297_v15  ;;  %v350_v27 = vmul.f32 %v343_v11, %v336_v22  ;;  %v351_v28 = vmul.f32 %v347_v12, %v335_v21 }
 0x11c   : > { %v356_v29 = vmul.f32 %v354_v38, %v350_v27  ;;  %v357_v30 = vmul.f32 %v354_v38, %v351_v28  ;;  %v363_v31 = vpop.permute.xlu1 %362 }
 0x11d   : > { %v365_v32 = vsel %vm364_vm4, %v361_v45, %v363_v31  ;;  %v366_v33 = vsel %vm364_vm4, %v363_v31, %v361_v45 }
 0x11e   : > { %v358_v35 = vadd.f32 %v356_v29, %v328_v25  ;;  %v359_v36 = vadd.f32 %v357_v30, %v329_v26  ;;  %v380_v37 = vmul.f32 %v373_v23, %v366_v33  ;;  %v381_v43 = vmul.f32 %v377_v24, %v365_v32 }
 0x120   : > { %v386_v46 = vmul.f32 %v814_v40, %v380_v37  ;;  %v387_v48 = vmul.f32 %v814_v40, %v381_v43  ;;  %v482_v38 = vpop.permute.xlu1 %481  ;;  %v447_v40 = vmul.f32 %v818_v42, %v441_v1  ;;  %v666_v42 = vld [vmem:[%s908_s3 + $0x10] ss:$8 sm:$0x3] }
 0x121   : > { %v535_v63 = vpop.permute.xlu0 %534  ;;  %v524_v7 = vrot.slane %v666_v42, %v795_v17  ;;  %v528_v8 = vrot.slane %v666_v42, %v797_v18 }
 0x122   : > { %v388_v51 = vadd.f32 %v386_v46, %v358_v35  ;;  %v389_v45 = vadd.f32 %v387_v48, %v359_v36 }
 0x124   : > { %v419_v56 = vadd.f32 %v809_v34, %v388_v51  ;;  %v420_v57 = vadd.f32 %v417_v49, %v389_v45  ;;  %v454_v58 = vpop.permute.xlu1 %453 }
 0x125   : > { %v456_v59 = vsel %vm455_vm5, %v828_v50, %v454_v58  ;;  %v457_v60 = vsel %vm455_vm5, %v454_v58, %v828_v50  ;;  %v512_v13 = vpop.permute.xlu0 %511 }
 0x126   : > { %v449_v0 = vadd.f32 %v447_v40, %v419_v56  ;;  %v450_v3 = vadd.f32 %v448_v55, %v420_v57  ;;  %v471_v4 = vmul.f32 %v464_v52, %v456_v59  ;;  %v472_v5 = vmul.f32 %v468_v53, %v457_v60 }
 0x128   : > { %v477_v34 = vmul.f32 %v812_v39, %v471_v4  ;;  %v478_v1 = vmul.f32 %v812_v39, %v472_v5  ;;  %v484_v2 = vpop.permute.xlu1 %483 }
 0x129   : > { %v486_v50 = vsel %vm485_vm6, %v482_v38, %v484_v2  ;;  %v487_v6 = vsel %vm485_vm6, %v484_v2, %v482_v38 }
 0x12a   : > { %v479_v9 = vadd.f32 %v477_v34, %v449_v0  ;;  %v480_v10 = vadd.f32 %v478_v1, %v450_v3  ;;  %v501_v11 = vmul.f32 %v494_v61, %v486_v50  ;;  %v502_v12 = vmul.f32 %v498_v62, %v487_v6 }
 0x12c   : > { %v507_v39 = vmul.f32 %v816_v41, %v501_v11  ;;  %v508_v14 = vmul.f32 %v816_v41, %v502_v12  ;;  %v514_v15 = vpop.permute.xlu1 %513 }
 0x12d   : > { %v516_v16 = vsel %vm515_vm7, %v512_v13, %v514_v15  ;;  %v517_v19 = vsel %vm515_vm7, %v514_v15, %v512_v13 }
 0x12e   : > { %v509_v20 = vadd.f32 %v507_v39, %v479_v9  ;;  %v510_v47 = vadd.f32 %v508_v14, %v480_v10  ;;  %v531_v21 = vmul.f32 %v524_v7, %v516_v16  ;;  %v532_v22 = vmul.f32 %v528_v8, %v517_v19 }
 0x130   : > { %v537_v17 = vmul.f32 %v535_v63, %v531_v21  ;;  %v538_v23 = vmul.f32 %v535_v63, %v532_v22 }
 0x132   : > { %v539_v18 = vadd.f32 %v537_v17, %v509_v20  ;;  %v540_v24 = vadd.f32 %v538_v23, %v510_v47 }
 0x134   : > { %v560_v25 = vcombine.low %v539_v18, %v540_v24  ;;  %v542_v41 = vsel %vm541_vm8, %v539_v18, 0.0  ;;  %v543_v26 = vsel %vm541_vm8, %v540_v24, 0.0  ;;  %v547_v27 = vmul.f32 %v539_v18, %v539_v18 }
 0x135   : > { %v544_v28 = vadd.f32 %v543_v26, %v542_v41  ;;  %v548_v29 = vmul.f32 %v540_v24, %v540_v24 }
 0x136   : > { %562 = vst [vmem:[%s231_s9] sm:$0xff] %v560_v25  ;;  %v549_v30 = vsel %vm541_vm8, %v547_v27, 0.0 }
 0x137   : > { %545 = vadd.xlane.f32.xlu0 %v544_v28  ;;  %v550_v31 = vsel %vm541_vm8, %v548_v29, 0.0 }
 0x138   : > { %v551_v32 = vadd.f32 %v550_v31, %v549_v30 }
 0x13a   : > { %552 = vadd.xlane.f32.xlu1 %v551_v32 }
 0x1c4   : > { %v546_v33 = vpop.xlane.xlu0 %545 }
 0x1c7   : > { %v553_v35 = vpop.xlane.xlu1 %552 }
 0x1c8   : > { %v555_v36 = vsel %vm554_vm9, %v546_v33, %v553_v35 }
 0x1c9   : > { %557 = vst.msk [vmem:[%s235_s13] sm:$0xf] %vm556_vm10, %v555_v36 }
 0x1ca PF: > { %s16_s18 = sadd.s32 1, %s714_s18  }
 0x1cb   : > { %p13_p4 = scmp.ge.s32.totalorder %s16_s18, 4  }
 0x1cd   :  { %15 = sbr.rel (!%p13_p4) target bundleno = 1 (0x1), region = 86 }

</bundles_post_ra>
